<compile_context>
chip_gen: v7x
topology: tpu7x:2x2x1
jax: 0.10.0
libtpu: 0.0.40
codegen_flags: <defaults>
</compile_context>

<pallas_src>
import functools

import jax
import jax.numpy as jnp
from jax.experimental import pallas as pl
from jax.experimental.pallas import tpu as pltpu

_LANES = 128
# 1024 rows x 128 lanes f32 = 512 KiB per input block; with 2 inputs x 2
# pipeline buffers this fits comfortably in scoped VMEM on v5e/v6e/v7x.
_MAX_BLOCK_ROWS = 1024


def _round_up(x, m):
    return ((x + m - 1) // m) * m


def _dice_partial_kernel(x_ref, t_ref, inter_ref, sums_ref, *, total_rows,
                         block_rows):
    """Per-block partials: inter = sum(sig(x)*t), sums = sum(sig(x)+t)."""
    x = x_ref[...].astype(jnp.float32)
    t = t_ref[...].astype(jnp.float32)
    s = jax.nn.sigmoid(x)

    if total_rows % block_rows != 0:
        # Last block sticks out past the array: mask out-of-bounds rows so
        # stale/garbage VMEM contents contribute exactly nothing.
        i = pl.program_id(0)
        row = jax.lax.broadcasted_iota(jnp.int32, x.shape, 0)
        valid = (i * block_rows + row) < total_rows
        s = jnp.where(valid, s, 0.0)
        t = jnp.where(valid, t, 0.0)

    # Reduce the (block_rows, 128) tile to a lane-dense (8, 128) partial.
    # The reshape splits the sublane axis into native (8, 128) tiles, so the
    # axis-0 sum is a pure chain of VPU vreg adds (no cross-lane XLU work).
    groups = block_rows // 8
    inter_ref[0] = jnp.sum((s * t).reshape(groups, 8, _LANES), axis=0)
    sums_ref[0] = jnp.sum((s + t).reshape(groups, 8, _LANES), axis=0)


def dice_loss(inputs, targets, smooth: float = 1.0):
    """Pallas TPU implementation of DiceLoss.forward. Returns scalar f32."""
    x = jnp.ravel(inputs)
    t = jnp.ravel(targets)
    if t.dtype == jnp.bool_:
        t = t.astype(jnp.int8)  # narrow, well-supported mask dtype
    n = x.shape[0]

    # Pad only to the next multiple of 128 (lane width) when needed; padded
    # elements contribute nothing (sigmoid(-1e9) == 0, target pad == 0).
    rem = n % _LANES
    if rem:
        pad = _LANES - rem
        x_pad_val = -1e9 if jnp.issubdtype(x.dtype, jnp.floating) else -(2 ** 30)
        x = jnp.concatenate([x, jnp.full((pad,), x_pad_val, dtype=x.dtype)])
        t = jnp.concatenate([t, jnp.zeros((pad,), dtype=t.dtype)])

    rows = x.shape[0] // _LANES
    x2 = x.reshape(rows, _LANES)
    t2 = t.reshape(rows, _LANES)

    # Multiple of 32 sublanes -> valid tiling for f32 / bf16 / int8 blocks.
    block_rows = min(_MAX_BLOCK_ROWS, _round_up(rows, 32))
    num_blocks = pl.cdiv(rows, block_rows)

    kernel = functools.partial(_dice_partial_kernel, total_rows=rows,
                               block_rows=block_rows)

    p_inter, p_sums = pl.pallas_call(
        kernel,
        out_shape=(
            jax.ShapeDtypeStruct((num_blocks, 8, _LANES), jnp.float32),
            jax.ShapeDtypeStruct((num_blocks, 8, _LANES), jnp.float32),
        ),
        grid_spec=pltpu.PrefetchScalarGridSpec(
            num_scalar_prefetch=0,
            grid=(num_blocks,),
            in_specs=[
                pl.BlockSpec((block_rows, _LANES), lambda i: (i, 0)),
                pl.BlockSpec((block_rows, _LANES), lambda i: (i, 0)),
            ],
            out_specs=[
                pl.BlockSpec((1, 8, _LANES), lambda i: (i, 0, 0)),
                pl.BlockSpec((1, 8, _LANES), lambda i: (i, 0, 0)),
            ],
        ),
        compiler_params=pltpu.CompilerParams(
            dimension_semantics=("parallel",),
            vmem_limit_bytes=32 * 1024 * 1024,
        ),
    )(x2, t2)

    # Tiny final reduction (num_blocks * 8 * 128 f32 values) + dice formula.
    smooth = jnp.float32(smooth)
    intersection = jnp.sum(p_inter)
    sums = jnp.sum(p_sums)
    dice = (2.0 * intersection + smooth) / (sums + smooth)
    return (1.0 - dice).astype(jnp.float32)


def _dice_loss_ref(inputs, targets, smooth=1.0):
    s = jax.nn.sigmoid(inputs.astype(jnp.float32)).ravel()
    t = targets.astype(jnp.float32).ravel()
    inter = jnp.sum(s * t)
    dice = (2.0 * inter + smooth) / (jnp.sum(s) + jnp.sum(t) + smooth)
    return 1.0 - dice


if __name__ == "__main__":
    key = jax.random.PRNGKey(0)
    k1, k2, k3, k4 = jax.random.split(key, 4)

    # Primary test: small NCHW logits + binary masks (batch=2, ch=4, 16x16).
    x = jax.random.normal(k1, (2, 4, 16, 16), dtype=jnp.float32)
    t = (jax.random.uniform(k2, (2, 4, 16, 16)) > 0.5).astype(jnp.float32)
    loss = jax.block_until_ready(dice_loss(x, t, smooth=1.0))
    ref = _dice_loss_ref(x, t, smooth=1.0)
    assert jnp.allclose(loss, ref, atol=1e-5, rtol=1e-5), (loss, ref)

    # Odd element count: exercises lane padding + in-kernel row mask.
    x2 = jax.random.normal(k3, (3, 5, 7), dtype=jnp.float32)
    t2 = (jax.random.uniform(k4, (3, 5, 7)) > 0.5).astype(jnp.float32)
    loss2 = jax.block_until_ready(dice_loss(x2, t2, smooth=1.0))
    ref2 = _dice_loss_ref(x2, t2, smooth=1.0)
    assert jnp.allclose(loss2, ref2, atol=1e-5, rtol=1e-5), (loss2, ref2)

    # Multi-block parallel grid with a ragged last block.
    x3 = jax.random.normal(k1, (2, 4, 128, 144), dtype=jnp.float32)
    t3 = (jax.random.uniform(k2, (2, 4, 128, 144)) > 0.5).astype(jnp.float32)
    loss3 = jax.block_until_ready(dice_loss(x3, t3, smooth=1.0))
    ref3 = _dice_loss_ref(x3, t3, smooth=1.0)
    assert jnp.allclose(loss3, ref3, atol=1e-4, rtol=1e-4), (loss3, ref3)

    print("KERNEL_OK")
</pallas_src>

<mosaic_0001>
module attributes {stable_mosaic.version = 11 : i64} {
  func.func @_dice_partial_kernel(%arg0: i32, %arg1: memref<32x128xf32, #tpu.memory_space<vmem>>, %arg2: memref<32x128xf32, #tpu.memory_space<vmem>>, %arg3: memref<1x8x128xf32, #tpu.memory_space<vmem>>, %arg4: memref<1x8x128xf32, #tpu.memory_space<vmem>>) attributes {dimension_semantics = [#tpu.dimension_semantics<parallel>], iteration_bounds = array<i64: 1>, scalar_prefetch = 0 : i64, scratch_operands = 0 : i64, tpu.core_type = #tpu.core_type<tc>, window_params = [{transform_indices = @transform_0, window_bounds = array<i64: 32, 128>}, {transform_indices = @transform_1, window_bounds = array<i64: 32, 128>}, {transform_indices = @transform_2, window_bounds = array<i64: 1, 8, 128>}, {transform_indices = @transform_3, window_bounds = array<i64: 1, 8, 128>}]} {
    %c0 = arith.constant 0 : index
    %c0_0 = arith.constant 0 : index
    %0 = vector.load %arg1[%c0, %c0_0] : memref<32x128xf32, #tpu.memory_space<vmem>>, vector<32x128xf32>
    %c0_1 = arith.constant 0 : index
    %c0_2 = arith.constant 0 : index
    %1 = vector.load %arg2[%c0_1, %c0_2] : memref<32x128xf32, #tpu.memory_space<vmem>>, vector<32x128xf32>
    %2 = arith.negf %0 : vector<32x128xf32>
    %3 = math.exp %2 : vector<32x128xf32>
    %cst = arith.constant 1.000000e+00 : f32
    %4 = vector.broadcast %cst : f32 to vector<32x128xf32>
    %5 = arith.addf %4, %3 : vector<32x128xf32>
    %6 = arith.divf %4, %5 : vector<32x128xf32>
    %7 = tpu.iota {dimensions = array<i32: 0>} : vector<32x128xi32>
    %c32_i32 = arith.constant 32 : i32
    %8 = arith.muli %arg0, %c32_i32 : i32
    %9 = vector.broadcast %8 : i32 to vector<32x128xi32>
    %10 = arith.addi %9, %7 : vector<32x128xi32>
    %c16_i32 = arith.constant 16 : i32
    %11 = vector.broadcast %c16_i32 : i32 to vector<32x128xi32>
    %12 = arith.cmpi slt, %10, %11 : vector<32x128xi32>
    %cst_3 = arith.constant 0.000000e+00 : f32
    %13 = vector.broadcast %cst_3 : f32 to vector<32x128xf32>
    %14 = arith.select %12, %6, %13 : vector<32x128xi1>, vector<32x128xf32>
    %cst_4 = arith.constant 0.000000e+00 : f32
    %15 = vector.broadcast %cst_4 : f32 to vector<32x128xf32>
    %16 = arith.select %12, %1, %15 : vector<32x128xi1>, vector<32x128xf32>
    %17 = arith.mulf %14, %16 : vector<32x128xf32>
    %18 = vector.shape_cast %17 : vector<32x128xf32> to vector<4x8x128xf32>
    %cst_5 = arith.constant dense<0.000000e+00> : vector<8x128xf32>
    %19 = vector.multi_reduction <add>, %18, %cst_5 [0] : vector<4x8x128xf32> to vector<8x128xf32>
    %c0_6 = arith.constant 0 : index
    %c0_7 = arith.constant 0 : index
    %c0_8 = arith.constant 0 : index
    %20 = vector.load %arg3[%c0_6, %c0_7, %c0_8] : memref<1x8x128xf32, #tpu.memory_space<vmem>>, vector<1x8x128xf32>
    %21 = vector.shape_cast %20 : vector<1x8x128xf32> to vector<8x128xf32>
    %22 = vector.shape_cast %19 : vector<8x128xf32> to vector<1x8x128xf32>
    tpu.vector_store %arg3[%c0_6, %c0_7, %c0_8], %22 {strides = array<i32>} : memref<1x8x128xf32, #tpu.memory_space<vmem>>, vector<1x8x128xf32>,
    %23 = arith.addf %14, %16 : vector<32x128xf32>
    %24 = vector.shape_cast %23 : vector<32x128xf32> to vector<4x8x128xf32>
    %cst_9 = arith.constant dense<0.000000e+00> : vector<8x128xf32>
    %25 = vector.multi_reduction <add>, %24, %cst_9 [0] : vector<4x8x128xf32> to vector<8x128xf32>
    %c0_10 = arith.constant 0 : index
    %c0_11 = arith.constant 0 : index
    %c0_12 = arith.constant 0 : index
    %26 = vector.load %arg4[%c0_10, %c0_11, %c0_12] : memref<1x8x128xf32, #tpu.memory_space<vmem>>, vector<1x8x128xf32>
    %27 = vector.shape_cast %26 : vector<1x8x128xf32> to vector<8x128xf32>
    %28 = vector.shape_cast %25 : vector<8x128xf32> to vector<1x8x128xf32>
    tpu.vector_store %arg4[%c0_10, %c0_11, %c0_12], %28 {strides = array<i32>} : memref<1x8x128xf32, #tpu.memory_space<vmem>>, vector<1x8x128xf32>,
    return
  }
  func.func @transform_0(%arg0: i32) -> (i32, i32) {
    %c0_i32 = arith.constant 0 : i32
    %c0_i32_0 = arith.constant 0 : i32
    return %arg0, %c0_i32 : i32, i32
  }
  func.func @transform_1(%arg0: i32) -> (i32, i32) {
    %c0_i32 = arith.constant 0 : i32
    %c0_i32_0 = arith.constant 0 : i32
    return %arg0, %c0_i32 : i32, i32
  }
  func.func @transform_2(%arg0: i32) -> (i32, i32, i32) {
    %c0_i32 = arith.constant 0 : i32
    %c0_i32_0 = arith.constant 0 : i32
    %c0_i32_1 = arith.constant 0 : i32
    return %arg0, %c0_i32, %c0_i32_0 : i32, i32, i32
  }
  func.func @transform_3(%arg0: i32) -> (i32, i32, i32) {
    %c0_i32 = arith.constant 0 : i32
    %c0_i32_0 = arith.constant 0 : i32
    %c0_i32_1 = arith.constant 0 : i32
    return %arg0, %c0_i32, %c0_i32_0 : i32, i32, i32
  }
}

</mosaic_0001>

<bundles_post_ra>
// kernel: tpu_custom_call.1
= control target key start
LH: loop header
LB: loop body
LE: loop exit
PB: predicated region body
PF: predicated region fallthrough
CT: control target
= control target key end

     0   :  { %9 = vsyncpa [#allocation3], 0  ;;  %s332_s0 = inlined_call_operand.hbm [shape: f32[16,128], index: 0, kind: input, shape index: {}]   ;;  %s333_s1 = inlined_call_operand.hbm [shape: f32[16,128], index: 1, kind: input, shape index: {}]   ;;  %s334_s2 = inlined_call_operand.hbm [shape: f32[1,8,128], index: 2, kind: output, shape index: {0}]   ;;  %s335_s3 = inlined_call_operand.hbm [shape: f32[1,8,128], index: 3, kind: output, shape index: {1}]  }
   0x1   :  { %10 = vsyncpa [#allocation6], 0 }
   0x2   :  { %11 = vsyncpa [#allocation4], 0 }
   0x3   :  { %12 = vsyncpa [#allocation9], 0 }
   0x4   :  { %17 = vsyncadd [#allocation3], 256  ;;  %s258_s12 = smov [#allocation2]   ;;  %s162_s16 = scalar_lea.hbm %s332_s0, 256 }
   0x5   :  { %s18_s13 = sshll.u32 %s258_s12, 4  ;;  %p163_p0 = scmp.ne.s32.totalorder %s332_s0, %s162_s16  ;;  %s19_s13 = int_to_ptr.vmem [resolvable:$true] %s18_s13 }
   0x6   :  { %p166_p1 = scmp.lt.u32.totalorder %s162_s16, %s332_s0 }
   0x8   :  { %p168_p2 = pnand %p166_p1, %p163_p0 }
   0xa   :  { %171 = shalt.err (!%p168_p2)
}
   0xb   :  { %s172_s21 = scalar_lea.vmem %s19_s13, 256  ;;  %s176_s22 = scalar_lea.vmem %s19_s13, 512 }
   0xc   :  { %p173_p3 = scmp.ne.s32.totalorder %s19_s13, %s172_s21  ;;  %p177_p4 = scmp.lt.s32.totalorder %s19_s13, %s19_s13 }
   0xd   :  { %p178_p5 = scmp.lt.s32.totalorder %s176_s22, %s172_s21 }
   0xf   :  { %p179_p6 = por %p178_p5, %p177_p4 }
  0x11   :  { %p180_p7 = pnand %p179_p6, %p173_p3 }
  0x13   :  { %183 = shalt.err (!%p180_p7)
}
  0x14   :  { %s259_s23 = smov 128   ;;  %s260_s24 = smov 8  }
  0x15   :  { %24 = dma.hbm_to_vmem [thread:$0]  %s332_s0, 256, %s19_s13, [#allocation3], %s259_s23, %s259_s23, %s260_s24  }
  0x16   :  { %29 = vsyncadd [#allocation6], 256  ;;  %s261_s27 = smov [#allocation5]   ;;  %s184_s4 = scalar_lea.hbm %s333_s1, 256 }
  0x17   :  { %s30_s28 = sshll.u32 %s261_s27, 4  ;;  %p185_p8 = scmp.ne.s32.totalorder %s333_s1, %s184_s4  ;;  %s31_s28 = int_to_ptr.vmem [resolvable:$true] %s30_s28 }
  0x18   :  { %p188_p9 = scmp.lt.u32.totalorder %s184_s4, %s333_s1 }
  0x1a   :  { %p190_p10 = pnand %p188_p9, %p185_p8 }
  0x1c   :  { %193 = shalt.err (!%p190_p10)
}
  0x1d   :  { %s194_s9 = scalar_lea.vmem %s31_s28, 256  ;;  %s198_s0 = scalar_lea.vmem %s31_s28, 512 }
  0x1e   :  { %p195_p11 = scmp.ne.s32.totalorder %s31_s28, %s194_s9  ;;  %p199_p12 = scmp.lt.s32.totalorder %s31_s28, %s31_s28 }
  0x1f   :  { %p200_p13 = scmp.lt.s32.totalorder %s198_s0, %s194_s9 }
  0x21   :  { %p201_p0 = por %p200_p13, %p199_p12 }
  0x23   :  { %p202_p1 = pnand %p201_p0, %p195_p11 }
  0x25   :  { %205 = shalt.err (!%p202_p1)
}
  0x26   :  { %36 = dma.hbm_to_vmem [thread:$0]  %s333_s1, 256, %s31_s28, [#allocation6], %s259_s23, %s259_s23, %s260_s24  }
  0x27   :  { %250 = dma.done.wait [#allocation3], 512  }
  0x28   :  { %251 = vsyncadd [#allocation3], 4294966784 }
  0x29   :  { %252 = dma.done.wait [#allocation6], 512  }
  0x2a   :  { %253 = vsyncadd [#allocation6], 4294966784  ;;  %v43_v0 = vld [vmem:[#allocation2] sm:$0xff]  ;;  %v44_v1 = vld [vmem:[#allocation2 + $0x8] sm:$0xff]  ;;  %s262_s1 = smov [#allocation7]   ;;  %s263_s13 = smov [#allocation8]  }
  0x2b   :  { %v144_v2 = vmul.f32 -1.442695, %v43_v0  ;;  %v145_v3 = vmul.f32 -1.442695, %v44_v1  ;;  %v47_v8 = vld [vmem:[#allocation5] sm:$0xff]  ;;  %v48_v9 = vld [vmem:[#allocation5 + $0x8] sm:$0xff] }
  0x2c   :  { %s120_s12 = sshll.u32 %s262_s1, 4  ;;  %s130_s14 = sshll.u32 %s263_s13, 4  ;;  %s121_s12 = int_to_ptr.vmem [resolvable:$true] %s120_s12  ;;  %s131_s14 = int_to_ptr.vmem [resolvable:$true] %s130_s14 }
  0x2d   :  { %154 = vpow2.f32 %v144_v2  ;;  %s206_s15 = scalar_lea.vmem %s121_s12, 128  ;;  %p211_p3 = scmp.lt.s32.totalorder %s121_s12, %s121_s12 }
  0x2e   :  { %156 = vpow2.f32 %v145_v3  ;;  %p207_p2 = scmp.ne.s32.totalorder %s121_s12, %s206_s15  ;;  %p212_p4 = scmp.lt.s32.totalorder %s206_s15, %s206_s15 }
  0x30   :  { %p213_p5 = por %p212_p4, %p211_p3 }
  0x32   :  { %p214_p6 = pnand %p213_p5, %p207_p2 }
  0x37   :  { %v155_v4 = vpop.eup %154 }
  0x38   :  { %v157_v5 = vpop.eup %156  ;;  %v63_v6 = vadd.f32 1.0, %v155_v4 }
  0x39   :  { %v64_v7 = vadd.f32 1.0, %v157_v5 }
  0x3a   :  { %158 = vrcp.f32 %v63_v6 }
  0x3b   :  { %160 = vrcp.f32 %v64_v7 }
  0x44   :  { %v159_v10 = vpop.eup %158 }
  0x45   :  { %v161_v11 = vpop.eup %160  ;;  %v98_v12 = vmul.f32 %v159_v10, %v47_v8  ;;  %v106_v13 = vadd.f32 %v159_v10, %v47_v8 }
  0x46   :  { %v99_v14 = vmul.f32 %v161_v11, %v48_v9  ;;  %v107_v15 = vadd.f32 %v161_v11, %v48_v9 }
  0x48   :  { %v102_v16 = vadd.f32 %v99_v14, %v98_v12  ;;  %v110_v17 = vadd.f32 %v107_v15, %v106_v13 }
  0x4a   :  { %105 = vst [vmem:[#allocation7] sm:$0xff] %v102_v16  ;;  %113 = vst [vmem:[#allocation8] sm:$0xff] %v110_v17 }
  0x4b   :  { %217 = shalt.err (!%p214_p6)
}
  0x4c   :  { %s218_s18 = scalar_lea.hbm %s334_s2, 128 }
  0x4d   :  { %p219_p7 = scmp.ne.s32.totalorder %s334_s2, %s218_s18  ;;  %p222_p8 = scmp.lt.u32.totalorder %s218_s18, %s334_s2 }
  0x4f   :  { %p224_p9 = pnand %p222_p8, %p219_p7 }
  0x51   :  { %227 = shalt.err (!%p224_p9)
}
  0x52   :  { %123 = dma.vmem_to_hbm [thread:$0]  %s121_s12, 128, %s334_s2, [#allocation4]  }
  0x53   :  { %s228_s25 = scalar_lea.vmem %s131_s14, 128  ;;  %p233_p11 = scmp.lt.s32.totalorder %s131_s14, %s131_s14 }
  0x54   :  { %p229_p10 = scmp.ne.s32.totalorder %s131_s14, %s228_s25  ;;  %p234_p12 = scmp.lt.s32.totalorder %s228_s25, %s228_s25 }
  0x56   :  { %p235_p13 = por %p234_p12, %p233_p11 }
  0x58   :  { %p236_p0 = pnand %p235_p13, %p229_p10 }
  0x5a   :  { %239 = shalt.err (!%p236_p0)
}
  0x5b   :  { %s240_s28 = scalar_lea.hbm %s335_s3, 128 }
  0x5c   :  { %p241_p1 = scmp.ne.s32.totalorder %s335_s3, %s240_s28  ;;  %p244_p2 = scmp.lt.u32.totalorder %s240_s28, %s335_s3 }
  0x5e   :  { %p246_p3 = pnand %p244_p2, %p241_p1 }
  0x60   :  { %249 = shalt.err (!%p246_p3)
}
  0x61   :  { %133 = dma.vmem_to_hbm [thread:$0]  %s131_s14, 128, %s335_s3, [#allocation9]  }
  0x62   :  { %254 = dma.done.wait [#allocation4], 128  }
  0x63   :  { %255 = vsyncadd [#allocation4], 4294967168 }
  0x64   :  { %256 = dma.done.wait [#allocation9], 128  }
  0x65   :  { %257 = vsyncadd [#allocation9], 4294967168 }
  0x66   :  { %140 = vsyncpa [#allocation3], 1 }
  0x67   :  { %141 = vsyncpa [#allocation6], 1 }
  0x68   :  { %142 = vsyncpa [#allocation4], 1 }
  0x69   :  { %143 = vsyncpa [#allocation9], 1 }

</bundles_post_ra>
